<compile_context>
chip_gen: v7x
topology: tpu7x:2x2x1
jax: 0.10.0
libtpu: 0.0.40
codegen_flags: <defaults>
</compile_context>

<pallas_src>
import numpy as np
import jax
import jax.numpy as jnp
from jax import lax
from jax.experimental import pallas as pl
from jax.experimental.pallas import tpu as pltpu


# ---------------------------------------------------------------------------
# State-space matrices (cont2discrete, zoh) — parameter setup, plain JAX/numpy
# ---------------------------------------------------------------------------
def state_space_matrices(memory_size: int, theta: float):
    Q = np.arange(memory_size, dtype=np.float64).reshape(-1, 1)
    R = (2 * Q + 1) / theta
    i, j = np.meshgrid(Q, Q, indexing="ij")
    A = R * np.where(i < j, -1.0, (-1.0) ** (i - j + 1))   # [M, M]
    B = R * (-1.0) ** Q                                     # [M, 1]

    # Zero-order-hold discretization with dt = 1.0:
    #   [Ad Bd; 0 I] = expm([[A, B], [0, 0]] * dt)
    # NOTE: computed in f32 (scipy's cont2discrete uses f64) — parameter-init
    # precision difference vs. the PyTorch module, not a kernel issue.
    M = memory_size
    aug = np.zeros((M + 1, M + 1), dtype=np.float64)
    aug[:M, :M] = A
    aug[:M, M:] = B
    aug_exp = jax.scipy.linalg.expm(jnp.asarray(aug, dtype=jnp.float32))
    Ad = np.asarray(aug_exp[:M, :M], dtype=np.float32)      # [M, M]
    Bd = np.asarray(aug_exp[:M, M:], dtype=np.float32)      # [M, 1]
    return Ad, Bd


# ---------------------------------------------------------------------------
# Parameter initialization (mirrors LMUCell.initParameters, psmnist=False)
# ---------------------------------------------------------------------------
def lecun_uniform(key, shape):
    fan_in = shape[1]
    limit = np.sqrt(3.0 / fan_in)
    return jax.random.uniform(key, shape, jnp.float32, -limit, limit)


def xavier_normal(key, shape):
    fan_out, fan_in = shape
    std = np.sqrt(2.0 / (fan_in + fan_out))
    return std * jax.random.normal(key, shape, jnp.float32)


def init_lmu_params(key, input_size, hidden_size, memory_size, theta):
    kx, kh, kwx, kwh, kwm = jax.random.split(key, 5)
    A, B = state_space_matrices(memory_size, theta)
    params = dict(
        A=jnp.asarray(A),                                    # [M, M]
        B=jnp.asarray(B),                                    # [M, 1]
        e_x=lecun_uniform(kx, (1, input_size)),              # [1, I]
        e_h=lecun_uniform(kh, (1, hidden_size)),             # [1, H]
        e_m=jnp.zeros((1, memory_size), jnp.float32),        # [1, M]
        W_x=xavier_normal(kwx, (hidden_size, input_size)),   # [H, I]
        W_h=xavier_normal(kwh, (hidden_size, hidden_size)),  # [H, H]
        W_m=xavier_normal(kwm, (hidden_size, memory_size)),  # [H, M]
    )
    return params


# ---------------------------------------------------------------------------
# Pallas kernel: Tc recurrent LMU steps per grid iteration, state in VMEM
# ---------------------------------------------------------------------------
def lmu_seq_kernel(xproj_ref, s0_ref, whm_ref, wmT_ref,
                   hseq_ref, mfin_ref, hm_scr):
    # Grid: (batch_tiles [parallel], time_chunks [arbitrary]).
    t_blk = pl.program_id(1)
    f32 = jnp.float32
    Tc = xproj_ref.shape[0]        # time steps per chunk (static)
    H = hseq_ref.shape[-1]
    M = mfin_ref.shape[-1]

    # Load the initial [h | m] state into resident VMEM scratch on the first
    # time chunk of this batch tile.
    @pl.when(t_blk == 0)
    def _():
        hm_scr[...] = s0_ref[...]

    def step(tc, hm):
        # Hoisted input projection for this step: [Bt, M+H] = [x@Bx | x@W_x^T]
        xp = xproj_ref[tc]
        # Single fused state matmul:  [h | m] @ [[Bh, W_h^T], [A_eff, 0]]
        hm_out = jnp.dot(hm, whm_ref[...], preferred_element_type=f32)
        m_new = xp[:, :M] + hm_out[:, :M]
        # Single dependent matmul on the critical path: m_new @ W_m^T
        h_new = jnp.tanh(xp[:, M:] + hm_out[:, M:]
                         + jnp.dot(m_new, wmT_ref[...],
                                   preferred_element_type=f32))
        hseq_ref[tc] = h_new                       # chunked [Tc, Bt, H] output
        return jnp.concatenate([h_new, m_new], axis=1)

    # Unrolled so the LLO scheduler sees the whole chunk.
    hm_fin = lax.fori_loop(0, Tc, step, hm_scr[...], unroll=True)
    hm_scr[...] = hm_fin

    # Final memory state: write only once, on the last time chunk.
    @pl.when(t_blk == pl.num_programs(1) - 1)
    def _():
        mfin_ref[...] = hm_fin[:, H:]


def lmu_forward_sequence(params, x_seq, h0, m0, *, time_chunk=8,
                         batch_tile=None):
    """Run T LMUCell steps. x_seq:[T,B,I], h0:[B,H], m0:[B,M]
    -> (h_seq:[T,B,H], (h_T:[B,H], m_T:[B,M]))."""
    T, B_, I = x_seq.shape
    H = h0.shape[1]
    M = m0.shape[1]
    f32 = jnp.float32

    # --- one-time algebraic folding + weight fusion -------------------------
    BT = params["B"].T                                # [1, M]
    Bx = params["e_x"].T @ BT                         # [I, M]
    Bh = params["e_h"].T @ BT                         # [H, M]
    A_eff = params["A"].T + params["e_m"].T @ BT      # [M, M]
    Wx_all = jnp.concatenate([Bx, params["W_x"].T], axis=1)          # [I, M+H]
    W_hm = jnp.concatenate(
        [jnp.concatenate([Bh, params["W_h"].T], axis=1),             # h rows
         jnp.concatenate([A_eff, jnp.zeros((M, H), f32)], axis=1)],  # m rows
        axis=0)                                                       # [H+M, M+H]
    WmT = params["W_m"].T                              # [M, H]
    # TODO(synk): at H, M >= 256 cast Wx_all / W_hm / WmT to bf16 (keep f32
    # accumulation) and set pipeline_mode=pl.Buffered(1) + vmem_limit_bytes
    # for the v7x 64 MiB VMEM budget.

    # --- pad batch to a multiple of 8 sublanes ------------------------------
    B_pad = ((B_ + 7) // 8) * 8
    if B_pad != B_:
        x_p = jnp.pad(x_seq, ((0, 0), (0, B_pad - B_), (0, 0)))
        h0_p = jnp.pad(h0, ((0, B_pad - B_), (0, 0)))
        m0_p = jnp.pad(m0, ((0, B_pad - B_), (0, 0)))
    else:
        x_p, h0_p, m0_p = x_seq, h0, m0

    Tc = min(time_chunk, T)
    assert T % Tc == 0, "seq_len must be divisible by the time chunk"
    Bt = batch_tile if batch_tile is not None else B_pad
    assert B_pad % Bt == 0 and Bt % 8 == 0
    nb, nt = B_pad // Bt, T // Tc

    # Hoisted input projection: one [T*B, I] x [I, M+H] matmul (fills the MXU)
    # instead of two tiny matmuls per recurrent step.
    xproj = jnp.einsum("tbi,ic->tbc", x_p, Wx_all)     # [T, B_pad, M+H]
    state0 = jnp.concatenate([h0_p, m0_p], axis=1)     # [B_pad, H+M]

    h_seq_p, m_fin_p = pl.pallas_call(
        lmu_seq_kernel,
        grid=(nb, nt),
        in_specs=[
            pl.BlockSpec((Tc, Bt, M + H), lambda b, t: (t, b, 0)),  # xproj chunk
            pl.BlockSpec((Bt, H + M), lambda b, t: (b, 0)),         # [h0|m0]
            pl.BlockSpec((H + M, M + H), lambda b, t: (0, 0)),      # fused W_hm
            pl.BlockSpec((M, H), lambda b, t: (0, 0)),              # W_m^T
        ],
        out_specs=(
            pl.BlockSpec((Tc, Bt, H), lambda b, t: (t, b, 0)),      # h_seq chunk
            pl.BlockSpec((Bt, M), lambda b, t: (b, 0)),             # final m
        ),
        out_shape=(
            jax.ShapeDtypeStruct((T, B_pad, H), f32),
            jax.ShapeDtypeStruct((B_pad, M), f32),
        ),
        scratch_shapes=[
            pltpu.VMEM((Bt, H + M), f32),              # resident [h | m] state
        ],
        compiler_params=pltpu.CompilerParams(
            dimension_semantics=("parallel", "arbitrary")),
    )(xproj, state0, W_hm, WmT)

    h_seq = h_seq_p[:, :B_]
    m_T = m_fin_p[:B_]
    return h_seq, (h_seq[-1], m_T)


def lmu_cell_forward(params, x, h, m):
    """Single LMUCell step (module forward signature). x:[B,I] -> (h,m)."""
    _, (h_new, m_new) = lmu_forward_sequence(params, x[None], h, m)
    return h_new, m_new


# ---------------------------------------------------------------------------
# Pure-JAX reference (mirrors torch F.linear semantics) for validation
# ---------------------------------------------------------------------------
def lmu_cell_reference(params, x, h, m):
    linear = lambda v, w: v @ w.T
    u = linear(x, params["e_x"]) + linear(h, params["e_h"]) + linear(m, params["e_m"])
    m_new = linear(m, params["A"]) + linear(u, params["B"])
    h_new = jnp.tanh(linear(x, params["W_x"]) + linear(h, params["W_h"])
                     + linear(m_new, params["W_m"]))
    return h_new, m_new


def lmu_sequence_reference(params, x_seq, h0, m0):
    def step(carry, x):
        h_new, m_new = lmu_cell_reference(params, x, carry[0], carry[1])
        return (h_new, m_new), h_new
    (h_T, m_T), h_seq = jax.lax.scan(step, (h0, m0), x_seq)
    return h_seq, (h_T, m_T)


if __name__ == "__main__":
    batch_size = 4
    input_size = 4
    hidden_size = 32
    memory_size = 32
    seq_len = 16          # 2 time chunks of 8 -> exercises state carry in VMEM
    theta = 8.0

    key = jax.random.PRNGKey(0)
    kp, kx, kh, km, ke = jax.random.split(key, 5)

    params = init_lmu_params(kp, input_size, hidden_size, memory_size, theta)

    x_seq = jax.random.normal(kx, (seq_len, batch_size, input_size), jnp.float32)
    h0 = jax.random.normal(kh, (batch_size, hidden_size), jnp.float32)
    m0 = jax.random.normal(km, (batch_size, memory_size), jnp.float32)

    # Sequence mode: T recurrent steps, chunked grid, state resident in VMEM.
    h_seq, (h_T, m_T) = lmu_forward_sequence(params, x_seq, h0, m0, time_chunk=8)
    jax.block_until_ready((h_seq, h_T, m_T))

    h_seq_ref, (h_T_ref, m_T_ref) = lmu_sequence_reference(params, x_seq, h0, m0)
    np.testing.assert_allclose(np.asarray(h_seq), np.asarray(h_seq_ref),
                               rtol=2e-4, atol=1e-4)
    np.testing.assert_allclose(np.asarray(m_T), np.asarray(m_T_ref),
                               rtol=2e-4, atol=1e-4)

    # Validate the A_eff = A^T + e_m^T B^T fold with a NONZERO e_m (module init
    # sets e_m = 0, which would leave that path untested).
    params_nz = dict(params)
    params_nz["e_m"] = 0.1 * jax.random.normal(ke, (1, memory_size), jnp.float32)
    h_seq2, (_, m_T2) = lmu_forward_sequence(params_nz, x_seq, h0, m0, time_chunk=8)
    jax.block_until_ready((h_seq2, m_T2))
    h_seq2_ref, (_, m_T2_ref) = lmu_sequence_reference(params_nz, x_seq, h0, m0)
    np.testing.assert_allclose(np.asarray(h_seq2), np.asarray(h_seq2_ref),
                               rtol=2e-4, atol=1e-4)
    np.testing.assert_allclose(np.asarray(m_T2), np.asarray(m_T2_ref),
                               rtol=2e-4, atol=1e-4)

    # Single-step call (exact module forward signature), T == 1.
    h1, m1 = lmu_cell_forward(params, x_seq[0], h0, m0)
    jax.block_until_ready((h1, m1))
    h1_ref, m1_ref = lmu_cell_reference(params, x_seq[0], h0, m0)
    np.testing.assert_allclose(np.asarray(h1), np.asarray(h1_ref),
                               rtol=2e-4, atol=1e-4)
    np.testing.assert_allclose(np.asarray(m1), np.asarray(m1_ref),
                               rtol=2e-4, atol=1e-4)

    print("KERNEL_OK")
</pallas_src>

<mosaic_0001>
module attributes {stable_mosaic.version = 11 : i64} {
  func.func @lmu_seq_kernel(%arg0: i32, %arg1: i32, %arg2: memref<8x8x64xf32, #tpu.memory_space<vmem>>, %arg3: memref<8x64xf32, #tpu.memory_space<vmem>>, %arg4: memref<64x64xf32, #tpu.memory_space<vmem>>, %arg5: memref<32x32xf32, #tpu.memory_space<vmem>>, %arg6: memref<8x8x32xf32, #tpu.memory_space<vmem>>, %arg7: memref<8x32xf32, #tpu.memory_space<vmem>>, %arg8: memref<8x64xf32, #tpu.memory_space<vmem>>) attributes {dimension_semantics = [#tpu.dimension_semantics<parallel>, #tpu.dimension_semantics<arbitrary>], iteration_bounds = array<i64: 1, 2>, scalar_prefetch = 0 : i64, scratch_operands = 1 : i64, tpu.core_type = #tpu.core_type<tc>, window_params = [{transform_indices = @transform_0, window_bounds = array<i64: 8, 8, 64>}, {transform_indices = @transform_1, window_bounds = array<i64: 8, 64>}, {pipeline_mode = #tpu.pipeline_mode<synchronous>, transform_indices = @transform_2, window_bounds = array<i64: 64, 64>}, {pipeline_mode = #tpu.pipeline_mode<synchronous>, transform_indices = @transform_3, window_bounds = array<i64: 32, 32>}, {transform_indices = @transform_4, window_bounds = array<i64: 8, 8, 32>}, {transform_indices = @transform_5, window_bounds = array<i64: 8, 32>}]} {
    %c0_i32 = arith.constant 0 : i32
    %0 = arith.cmpi eq, %arg1, %c0_i32 : i32
    %1 = arith.extui %0 : i1 to i32
    %c0_i32_0 = arith.constant 0 : i32
    %2 = arith.cmpi ne, %1, %c0_i32_0 : i32
    scf.if %2 {
      %c0_86 = arith.constant 0 : index
      %c0_87 = arith.constant 0 : index
      %168 = vector.load %arg3[%c0_86, %c0_87] : memref<8x64xf32, #tpu.memory_space<vmem>>, vector<8x64xf32>
      %c0_88 = arith.constant 0 : index
      %c0_89 = arith.constant 0 : index
      %169 = vector.load %arg8[%c0_88, %c0_89] : memref<8x64xf32, #tpu.memory_space<vmem>>, vector<8x64xf32>
      tpu.vector_store %arg8[%c0_88, %c0_89], %168 {strides = array<i32>} : memref<8x64xf32, #tpu.memory_space<vmem>>, vector<8x64xf32>,
    } else {
    }
    %c0 = arith.constant 0 : index
    %c0_1 = arith.constant 0 : index
    %3 = vector.load %arg8[%c0, %c0_1] : memref<8x64xf32, #tpu.memory_space<vmem>>, vector<8x64xf32>
    %c0_i32_2 = arith.constant 0 : i32
    %4 = arith.index_cast %c0_i32_2 : i32 to index
    %c0_3 = arith.constant 0 : index
    %c0_4 = arith.constant 0 : index
    %5 = vector.load %arg2[%4, %c0_3, %c0_4] : memref<8x8x64xf32, #tpu.memory_space<vmem>>, vector<1x8x64xf32>
    %6 = vector.shape_cast %5 : vector<1x8x64xf32> to vector<8x64xf32>
    %c0_5 = arith.constant 0 : index
    %c0_6 = arith.constant 0 : index
    %7 = vector.load %arg4[%c0_5, %c0_6] : memref<64x64xf32, #tpu.memory_space<vmem>>, vector<64x64xf32>
    %cst = arith.constant dense<0.000000e+00> : vector<8x64xf32>
    %8 = tpu.matmul %3, %7, %cst {dimension_numbers = #tpu.dot_dimension_numbers<[1], [0], [0], [1], [0, 0, 1, 1], [], []>} : vector<8x64xf32>, vector<64x64xf32>, vector<8x64xf32> -> vector<8x64xf32>
    %9 = vector.extract_strided_slice %6 {offsets = [0, 0], sizes = [8, 32], strides = [1, 1]} : vector<8x64xf32> to vector<8x32xf32>
    %10 = vector.extract_strided_slice %8 {offsets = [0, 0], sizes = [8, 32], strides = [1, 1]} : vector<8x64xf32> to vector<8x32xf32>
    %11 = arith.addf %9, %10 : vector<8x32xf32>
    %12 = vector.extract_strided_slice %6 {offsets = [0, 32], sizes = [8, 32], strides = [1, 1]} : vector<8x64xf32> to vector<8x32xf32>
    %13 = vector.extract_strided_slice %8 {offsets = [0, 32], sizes = [8, 32], strides = [1, 1]} : vector<8x64xf32> to vector<8x32xf32>
    %14 = arith.addf %12, %13 : vector<8x32xf32>
    %c0_7 = arith.constant 0 : index
    %c0_8 = arith.constant 0 : index
    %15 = vector.load %arg5[%c0_7, %c0_8] : memref<32x32xf32, #tpu.memory_space<vmem>>, vector<32x32xf32>
    %cst_9 = arith.constant dense<0.000000e+00> : vector<8x32xf32>
    %16 = tpu.matmul %11, %15, %cst_9 {dimension_numbers = #tpu.dot_dimension_numbers<[1], [0], [0], [1], [0, 0, 1, 1], [], []>} : vector<8x32xf32>, vector<32x32xf32>, vector<8x32xf32> -> vector<8x32xf32>
    %17 = arith.addf %14, %16 : vector<8x32xf32>
    %18 = math.tanh %17 : vector<8x32xf32>
    %19 = arith.index_cast %c0_i32_2 : i32 to index
    %c0_10 = arith.constant 0 : index
    %c0_11 = arith.constant 0 : index
    %20 = vector.load %arg6[%19, %c0_10, %c0_11] : memref<8x8x32xf32, #tpu.memory_space<vmem>>, vector<1x8x32xf32>
    %21 = vector.shape_cast %20 : vector<1x8x32xf32> to vector<8x32xf32>
    %22 = vector.shape_cast %18 : vector<8x32xf32> to vector<1x8x32xf32>
    tpu.vector_store %arg6[%19, %c0_10, %c0_11], %22 {strides = array<i32>} : memref<8x8x32xf32, #tpu.memory_space<vmem>>, vector<1x8x32xf32>,
    %23 = tpu.concatenate %18, %11 in 1 : vector<8x32xf32>, vector<8x32xf32> -> vector<8x64xf32>
    %c1_i32 = arith.constant 1 : i32
    %24 = arith.index_cast %c1_i32 : i32 to index
    %c0_12 = arith.constant 0 : index
    %c0_13 = arith.constant 0 : index
    %25 = vector.load %arg2[%24, %c0_12, %c0_13] : memref<8x8x64xf32, #tpu.memory_space<vmem>>, vector<1x8x64xf32>
    %26 = vector.shape_cast %25 : vector<1x8x64xf32> to vector<8x64xf32>
    %c0_14 = arith.constant 0 : index
    %c0_15 = arith.constant 0 : index
    %27 = vector.load %arg4[%c0_14, %c0_15] : memref<64x64xf32, #tpu.memory_space<vmem>>, vector<64x64xf32>
    %cst_16 = arith.constant dense<0.000000e+00> : vector<8x64xf32>
    %28 = tpu.matmul %23, %27, %cst_16 {dimension_numbers = #tpu.dot_dimension_numbers<[1], [0], [0], [1], [0, 0, 1, 1], [], []>} : vector<8x64xf32>, vector<64x64xf32>, vector<8x64xf32> -> vector<8x64xf32>
    %29 = vector.extract_strided_slice %26 {offsets = [0, 0], sizes = [8, 32], strides = [1, 1]} : vector<8x64xf32> to vector<8x32xf32>
    %30 = vector.extract_strided_slice %28 {offsets = [0, 0], sizes = [8, 32], strides = [1, 1]} : vector<8x64xf32> to vector<8x32xf32>
    %31 = arith.addf %29, %30 : vector<8x32xf32>
    %32 = vector.extract_strided_slice %26 {offsets = [0, 32], sizes = [8, 32], strides = [1, 1]} : vector<8x64xf32> to vector<8x32xf32>
    %33 = vector.extract_strided_slice %28 {offsets = [0, 32], sizes = [8, 32], strides = [1, 1]} : vector<8x64xf32> to vector<8x32xf32>
    %34 = arith.addf %32, %33 : vector<8x32xf32>
    %c0_17 = arith.constant 0 : index
    %c0_18 = arith.constant 0 : index
    %35 = vector.load %arg5[%c0_17, %c0_18] : memref<32x32xf32, #tpu.memory_space<vmem>>, vector<32x32xf32>
    %cst_19 = arith.constant dense<0.000000e+00> : vector<8x32xf32>
    %36 = tpu.matmul %31, %35, %cst_19 {dimension_numbers = #tpu.dot_dimension_numbers<[1], [0], [0], [1], [0, 0, 1, 1], [], []>} : vector<8x32xf32>, vector<32x32xf32>, vector<8x32xf32> -> vector<8x32xf32>
    %37 = arith.addf %34, %36 : vector<8x32xf32>
    %38 = math.tanh %37 : vector<8x32xf32>
    %39 = arith.index_cast %c1_i32 : i32 to index
    %c0_20 = arith.constant 0 : index
    %c0_21 = arith.constant 0 : index
    %40 = vector.load %arg6[%39, %c0_20, %c0_21] : memref<8x8x32xf32, #tpu.memory_space<vmem>>, vector<1x8x32xf32>
    %41 = vector.shape_cast %40 : vector<1x8x32xf32> to vector<8x32xf32>
    %42 = vector.shape_cast %38 : vector<8x32xf32> to vector<1x8x32xf32>
    tpu.vector_store %arg6[%39, %c0_20, %c0_21], %42 {strides = array<i32>} : memref<8x8x32xf32, #tpu.memory_space<vmem>>, vector<1x8x32xf32>,
    %43 = tpu.concatenate %38, %31 in 1 : vector<8x32xf32>, vector<8x32xf32> -> vector<8x64xf32>
    %c2_i32 = arith.constant 2 : i32
    %44 = arith.index_cast %c2_i32 : i32 to index
    %c0_22 = arith.constant 0 : index
    %c0_23 = arith.constant 0 : index
    %45 = vector.load %arg2[%44, %c0_22, %c0_23] : memref<8x8x64xf32, #tpu.memory_space<vmem>>, vector<1x8x64xf32>
    %46 = vector.shape_cast %45 : vector<1x8x64xf32> to vector<8x64xf32>
    %c0_24 = arith.constant 0 : index
    %c0_25 = arith.constant 0 : index
    %47 = vector.load %arg4[%c0_24, %c0_25] : memref<64x64xf32, #tpu.memory_space<vmem>>, vector<64x64xf32>
    %cst_26 = arith.constant dense<0.000000e+00> : vector<8x64xf32>
    %48 = tpu.matmul %43, %47, %cst_26 {dimension_numbers = #tpu.dot_dimension_numbers<[1], [0], [0], [1], [0, 0, 1, 1], [], []>} : vector<8x64xf32>, vector<64x64xf32>, vector<8x64xf32> -> vector<8x64xf32>
    %49 = vector.extract_strided_slice %46 {offsets = [0, 0], sizes = [8, 32], strides = [1, 1]} : vector<8x64xf32> to vector<8x32xf32>
    %50 = vector.extract_strided_slice %48 {offsets = [0, 0], sizes = [8, 32], strides = [1, 1]} : vector<8x64xf32> to vector<8x32xf32>
    %51 = arith.addf %49, %50 : vector<8x32xf32>
    %52 = vector.extract_strided_slice %46 {offsets = [0, 32], sizes = [8, 32], strides = [1, 1]} : vector<8x64xf32> to vector<8x32xf32>
    %53 = vector.extract_strided_slice %48 {offsets = [0, 32], sizes = [8, 32], strides = [1, 1]} : vector<8x64xf32> to vector<8x32xf32>
    %54 = arith.addf %52, %53 : vector<8x32xf32>
    %c0_27 = arith.constant 0 : index
    %c0_28 = arith.constant 0 : index
    %55 = vector.load %arg5[%c0_27, %c0_28] : memref<32x32xf32, #tpu.memory_space<vmem>>, vector<32x32xf32>
    %cst_29 = arith.constant dense<0.000000e+00> : vector<8x32xf32>
    %56 = tpu.matmul %51, %55, %cst_29 {dimension_numbers = #tpu.dot_dimension_numbers<[1], [0], [0], [1], [0, 0, 1, 1], [], []>} : vector<8x32xf32>, vector<32x32xf32>, vector<8x32xf32> -> vector<8x32xf32>
    %57 = arith.addf %54, %56 : vector<8x32xf32>
    %58 = math.tanh %57 : vector<8x32xf32>
    %59 = arith.index_cast %c2_i32 : i32 to index
    %c0_30 = arith.constant 0 : index
    %c0_31 = arith.constant 0 : index
    %60 = vector.load %arg6[%59, %c0_30, %c0_31] : memref<8x8x32xf32, #tpu.memory_space<vmem>>, vector<1x8x32xf32>
    %61 = vector.shape_cast %60 : vector<1x8x32xf32> to vector<8x32xf32>
    %62 = vector.shape_cast %58 : vector<8x32xf32> to vector<1x8x32xf32>
    tpu.vector_store %arg6[%59, %c0_30, %c0_31], %62 {strides = array<i32>} : memref<8x8x32xf32, #tpu.memory_space<vmem>>, vector<1x8x32xf32>,
    %63 = tpu.concatenate %58, %51 in 1 : vector<8x32xf32>, vector<8x32xf32> -> vector<8x64xf32>
    %c3_i32 = arith.constant 3 : i32
    %64 = arith.index_cast %c3_i32 : i32 to index
    %c0_32 = arith.constant 0 : index
    %c0_33 = arith.constant 0 : index
    %65 = vector.load %arg2[%64, %c0_32, %c0_33] : memref<8x8x64xf32, #tpu.memory_space<vmem>>, vector<1x8x64xf32>
    %66 = vector.shape_cast %65 : vector<1x8x64xf32> to vector<8x64xf32>
    %c0_34 = arith.constant 0 : index
    %c0_35 = arith.constant 0 : index
    %67 = vector.load %arg4[%c0_34, %c0_35] : memref<64x64xf32, #tpu.memory_space<vmem>>, vector<64x64xf32>
    %cst_36 = arith.constant dense<0.000000e+00> : vector<8x64xf32>
    %68 = tpu.matmul %63, %67, %cst_36 {dimension_numbers = #tpu.dot_dimension_numbers<[1], [0], [0], [1], [0, 0, 1, 1], [], []>} : vector<8x64xf32>, vector<64x64xf32>, vector<8x64xf32> -> vector<8x64xf32>
    %69 = vector.extract_strided_slice %66 {offsets = [0, 0], sizes = [8, 32], strides = [1, 1]} : vector<8x64xf32> to vector<8x32xf32>
    %70 = vector.extract_strided_slice %68 {offsets = [0, 0], sizes = [8, 32], strides = [1, 1]} : vector<8x64xf32> to vector<8x32xf32>
    %71 = arith.addf %69, %70 : vector<8x32xf32>
    %72 = vector.extract_strided_slice %66 {offsets = [0, 32], sizes = [8, 32], strides = [1, 1]} : vector<8x64xf32> to vector<8x32xf32>
    %73 = vector.extract_strided_slice %68 {offsets = [0, 32], sizes = [8, 32], strides = [1, 1]} : vector<8x64xf32> to vector<8x32xf32>
    %74 = arith.addf %72, %73 : vector<8x32xf32>
    %c0_37 = arith.constant 0 : index
    %c0_38 = arith.constant 0 : index
    %75 = vector.load %arg5[%c0_37, %c0_38] : memref<32x32xf32, #tpu.memory_space<vmem>>, vector<32x32xf32>
    %cst_39 = arith.constant dense<0.000000e+00> : vector<8x32xf32>
    %76 = tpu.matmul %71, %75, %cst_39 {dimension_numbers = #tpu.dot_dimension_numbers<[1], [0], [0], [1], [0, 0, 1, 1], [], []>} : vector<8x32xf32>, vector<32x32xf32>, vector<8x32xf32> -> vector<8x32xf32>
    %77 = arith.addf %74, %76 : vector<8x32xf32>
    %78 = math.tanh %77 : vector<8x32xf32>
    %79 = arith.index_cast %c3_i32 : i32 to index
    %c0_40 = arith.constant 0 : index
    %c0_41 = arith.constant 0 : index
    %80 = vector.load %arg6[%79, %c0_40, %c0_41] : memref<8x8x32xf32, #tpu.memory_space<vmem>>, vector<1x8x32xf32>
    %81 = vector.shape_cast %80 : vector<1x8x32xf32> to vector<8x32xf32>
    %82 = vector.shape_cast %78 : vector<8x32xf32> to vector<1x8x32xf32>
    tpu.vector_store %arg6[%79, %c0_40, %c0_41], %82 {strides = array<i32>} : memref<8x8x32xf32, #tpu.memory_space<vmem>>, vector<1x8x32xf32>,
    %83 = tpu.concatenate %78, %71 in 1 : vector<8x32xf32>, vector<8x32xf32> -> vector<8x64xf32>
    %c4_i32 = arith.constant 4 : i32
    %84 = arith.index_cast %c4_i32 : i32 to index
    %c0_42 = arith.constant 0 : index
    %c0_43 = arith.constant 0 : index
    %85 = vector.load %arg2[%84, %c0_42, %c0_43] : memref<8x8x64xf32, #tpu.memory_space<vmem>>, vector<1x8x64xf32>
    %86 = vector.shape_cast %85 : vector<1x8x64xf32> to vector<8x64xf32>
    %c0_44 = arith.constant 0 : index
    %c0_45 = arith.constant 0 : index
    %87 = vector.load %arg4[%c0_44, %c0_45] : memref<64x64xf32, #tpu.memory_space<vmem>>, vector<64x64xf32>
    %cst_46 = arith.constant dense<0.000000e+00> : vector<8x64xf32>
    %88 = tpu.matmul %83, %87, %cst_46 {dimension_numbers = #tpu.dot_dimension_numbers<[1], [0], [0], [1], [0, 0, 1, 1], [], []>} : vector<8x64xf32>, vector<64x64xf32>, vector<8x64xf32> -> vector<8x64xf32>
    %89 = vector.extract_strided_slice %86 {offsets = [0, 0], sizes = [8, 32], strides = [1, 1]} : vector<8x64xf32> to vector<8x32xf32>
    %90 = vector.extract_strided_slice %88 {offsets = [0, 0], sizes = [8, 32], strides = [1, 1]} : vector<8x64xf32> to vector<8x32xf32>
    %91 = arith.addf %89, %90 : vector<8x32xf32>
    %92 = vector.extract_strided_slice %86 {offsets = [0, 32], sizes = [8, 32], strides = [1, 1]} : vector<8x64xf32> to vector<8x32xf32>
    %93 = vector.extract_strided_slice %88 {offsets = [0, 32], sizes = [8, 32], strides = [1, 1]} : vector<8x64xf32> to vector<8x32xf32>
    %94 = arith.addf %92, %93 : vector<8x32xf32>
    %c0_47 = arith.constant 0 : index
    %c0_48 = arith.constant 0 : index
    %95 = vector.load %arg5[%c0_47, %c0_48] : memref<32x32xf32, #tpu.memory_space<vmem>>, vector<32x32xf32>
    %cst_49 = arith.constant dense<0.000000e+00> : vector<8x32xf32>
    %96 = tpu.matmul %91, %95, %cst_49 {dimension_numbers = #tpu.dot_dimension_numbers<[1], [0], [0], [1], [0, 0, 1, 1], [], []>} : vector<8x32xf32>, vector<32x32xf32>, vector<8x32xf32> -> vector<8x32xf32>
    %97 = arith.addf %94, %96 : vector<8x32xf32>
    %98 = math.tanh %97 : vector<8x32xf32>
    %99 = arith.index_cast %c4_i32 : i32 to index
    %c0_50 = arith.constant 0 : index
    %c0_51 = arith.constant 0 : index
    %100 = vector.load %arg6[%99, %c0_50, %c0_51] : memref<8x8x32xf32, #tpu.memory_space<vmem>>, vector<1x8x32xf32>
    %101 = vector.shape_cast %100 : vector<1x8x32xf32> to vector<8x32xf32>
    %102 = vector.shape_cast %98 : vector<8x32xf32> to vector<1x8x32xf32>
    tpu.vector_store %arg6[%99, %c0_50, %c0_51], %102 {strides = array<i32>} : memref<8x8x32xf32, #tpu.memory_space<vmem>>, vector<1x8x32xf32>,
    %103 = tpu.concatenate %98, %91 in 1 : vector<8x32xf32>, vector<8x32xf32> -> vector<8x64xf32>
    %c5_i32 = arith.constant 5 : i32
    %104 = arith.index_cast %c5_i32 : i32 to index
    %c0_52 = arith.constant 0 : index
    %c0_53 = arith.constant 0 : index
    %105 = vector.load %arg2[%104, %c0_52, %c0_53] : memref<8x8x64xf32, #tpu.memory_space<vmem>>, vector<1x8x64xf32>
    %106 = vector.shape_cast %105 : vector<1x8x64xf32> to vector<8x64xf32>
    %c0_54 = arith.constant 0 : index
    %c0_55 = arith.constant 0 : index
    %107 = vector.load %arg4[%c0_54, %c0_55] : memref<64x64xf32, #tpu.memory_space<vmem>>, vector<64x64xf32>
    %cst_56 = arith.constant dense<0.000000e+00> : vector<8x64xf32>
    %108 = tpu.matmul %103, %107, %cst_56 {dimension_numbers = #tpu.dot_dimension_numbers<[1], [0], [0], [1], [0, 0, 1, 1], [], []>} : vector<8x64xf32>, vector<64x64xf32>, vector<8x64xf32> -> vector<8x64xf32>
    %109 = vector.extract_strided_slice %106 {offsets = [0, 0], sizes = [8, 32], strides = [1, 1]} : vector<8x64xf32> to vector<8x32xf32>
    %110 = vector.extract_strided_slice %108 {offsets = [0, 0], sizes = [8, 32], strides = [1, 1]} : vector<8x64xf32> to vector<8x32xf32>
    %111 = arith.addf %109, %110 : vector<8x32xf32>
    %112 = vector.extract_strided_slice %106 {offsets = [0, 32], sizes = [8, 32], strides = [1, 1]} : vector<8x64xf32> to vector<8x32xf32>
    %113 = vector.extract_strided_slice %108 {offsets = [0, 32], sizes = [8, 32], strides = [1, 1]} : vector<8x64xf32> to vector<8x32xf32>
    %114 = arith.addf %112, %113 : vector<8x32xf32>
    %c0_57 = arith.constant 0 : index
    %c0_58 = arith.constant 0 : index
    %115 = vector.load %arg5[%c0_57, %c0_58] : memref<32x32xf32, #tpu.memory_space<vmem>>, vector<32x32xf32>
    %cst_59 = arith.constant dense<0.000000e+00> : vector<8x32xf32>
    %116 = tpu.matmul %111, %115, %cst_59 {dimension_numbers = #tpu.dot_dimension_numbers<[1], [0], [0], [1], [0, 0, 1, 1], [], []>} : vector<8x32xf32>, vector<32x32xf32>, vector<8x32xf32> -> vector<8x32xf32>
    %117 = arith.addf %114, %116 : vector<8x32xf32>
    %118 = math.tanh %117 : vector<8x32xf32>
    %119 = arith.index_cast %c5_i32 : i32 to index
    %c0_60 = arith.constant 0 : index
    %c0_61 = arith.constant 0 : index
    %120 = vector.load %arg6[%119, %c0_60, %c0_61] : memref<8x8x32xf32, #tpu.memory_space<vmem>>, vector<1x8x32xf32>
    %121 = vector.shape_cast %120 : vector<1x8x32xf32> to vector<8x32xf32>
    %122 = vector.shape_cast %118 : vector<8x32xf32> to vector<1x8x32xf32>
    tpu.vector_store %arg6[%119, %c0_60, %c0_61], %122 {strides = array<i32>} : memref<8x8x32xf32, #tpu.memory_space<vmem>>, vector<1x8x32xf32>,
    %123 = tpu.concatenate %118, %111 in 1 : vector<8x32xf32>, vector<8x32xf32> -> vector<8x64xf32>
    %c6_i32 = arith.constant 6 : i32
    %124 = arith.index_cast %c6_i32 : i32 to index
    %c0_62 = arith.constant 0 : index
    %c0_63 = arith.constant 0 : index
    %125 = vector.load %arg2[%124, %c0_62, %c0_63] : memref<8x8x64xf32, #tpu.memory_space<vmem>>, vector<1x8x64xf32>
    %126 = vector.shape_cast %125 : vector<1x8x64xf32> to vector<8x64xf32>
    %c0_64 = arith.constant 0 : index
    %c0_65 = arith.constant 0 : index
    %127 = vector.load %arg4[%c0_64, %c0_65] : memref<64x64xf32, #tpu.memory_space<vmem>>, vector<64x64xf32>
    %cst_66 = arith.constant dense<0.000000e+00> : vector<8x64xf32>
    %128 = tpu.matmul %123, %127, %cst_66 {dimension_numbers = #tpu.dot_dimension_numbers<[1], [0], [0], [1], [0, 0, 1, 1], [], []>} : vector<8x64xf32>, vector<64x64xf32>, vector<8x64xf32> -> vector<8x64xf32>
    %129 = vector.extract_strided_slice %126 {offsets = [0, 0], sizes = [8, 32], strides = [1, 1]} : vector<8x64xf32> to vector<8x32xf32>
    %130 = vector.extract_strided_slice %128 {offsets = [0, 0], sizes = [8, 32], strides = [1, 1]} : vector<8x64xf32> to vector<8x32xf32>
    %131 = arith.addf %129, %130 : vector<8x32xf32>
    %132 = vector.extract_strided_slice %126 {offsets = [0, 32], sizes = [8, 32], strides = [1, 1]} : vector<8x64xf32> to vector<8x32xf32>
    %133 = vector.extract_strided_slice %128 {offsets = [0, 32], sizes = [8, 32], strides = [1, 1]} : vector<8x64xf32> to vector<8x32xf32>
    %134 = arith.addf %132, %133 : vector<8x32xf32>
    %c0_67 = arith.constant 0 : index
    %c0_68 = arith.constant 0 : index
    %135 = vector.load %arg5[%c0_67, %c0_68] : memref<32x32xf32, #tpu.memory_space<vmem>>, vector<32x32xf32>
    %cst_69 = arith.constant dense<0.000000e+00> : vector<8x32xf32>
    %136 = tpu.matmul %131, %135, %cst_69 {dimension_numbers = #tpu.dot_dimension_numbers<[1], [0], [0], [1], [0, 0, 1, 1], [], []>} : vector<8x32xf32>, vector<32x32xf32>, vector<8x32xf32> -> vector<8x32xf32>
    %137 = arith.addf %134, %136 : vector<8x32xf32>
    %138 = math.tanh %137 : vector<8x32xf32>
    %139 = arith.index_cast %c6_i32 : i32 to index
    %c0_70 = arith.constant 0 : index
    %c0_71 = arith.constant 0 : index
    %140 = vector.load %arg6[%139, %c0_70, %c0_71] : memref<8x8x32xf32, #tpu.memory_space<vmem>>, vector<1x8x32xf32>
    %141 = vector.shape_cast %140 : vector<1x8x32xf32> to vector<8x32xf32>
    %142 = vector.shape_cast %138 : vector<8x32xf32> to vector<1x8x32xf32>
    tpu.vector_store %arg6[%139, %c0_70, %c0_71], %142 {strides = array<i32>} : memref<8x8x32xf32, #tpu.memory_space<vmem>>, vector<1x8x32xf32>,
    %143 = tpu.concatenate %138, %131 in 1 : vector<8x32xf32>, vector<8x32xf32> -> vector<8x64xf32>
    %c7_i32 = arith.constant 7 : i32
    %144 = arith.index_cast %c7_i32 : i32 to index
    %c0_72 = arith.constant 0 : index
    %c0_73 = arith.constant 0 : index
    %145 = vector.load %arg2[%144, %c0_72, %c0_73] : memref<8x8x64xf32, #tpu.memory_space<vmem>>, vector<1x8x64xf32>
    %146 = vector.shape_cast %145 : vector<1x8x64xf32> to vector<8x64xf32>
    %c0_74 = arith.constant 0 : index
    %c0_75 = arith.constant 0 : index
    %147 = vector.load %arg4[%c0_74, %c0_75] : memref<64x64xf32, #tpu.memory_space<vmem>>, vector<64x64xf32>
    %cst_76 = arith.constant dense<0.000000e+00> : vector<8x64xf32>
    %148 = tpu.matmul %143, %147, %cst_76 {dimension_numbers = #tpu.dot_dimension_numbers<[1], [0], [0], [1], [0, 0, 1, 1], [], []>} : vector<8x64xf32>, vector<64x64xf32>, vector<8x64xf32> -> vector<8x64xf32>
    %149 = vector.extract_strided_slice %146 {offsets = [0, 0], sizes = [8, 32], strides = [1, 1]} : vector<8x64xf32> to vector<8x32xf32>
    %150 = vector.extract_strided_slice %148 {offsets = [0, 0], sizes = [8, 32], strides = [1, 1]} : vector<8x64xf32> to vector<8x32xf32>
    %151 = arith.addf %149, %150 : vector<8x32xf32>
    %152 = vector.extract_strided_slice %146 {offsets = [0, 32], sizes = [8, 32], strides = [1, 1]} : vector<8x64xf32> to vector<8x32xf32>
    %153 = vector.extract_strided_slice %148 {offsets = [0, 32], sizes = [8, 32], strides = [1, 1]} : vector<8x64xf32> to vector<8x32xf32>
    %154 = arith.addf %152, %153 : vector<8x32xf32>
    %c0_77 = arith.constant 0 : index
    %c0_78 = arith.constant 0 : index
    %155 = vector.load %arg5[%c0_77, %c0_78] : memref<32x32xf32, #tpu.memory_space<vmem>>, vector<32x32xf32>
    %cst_79 = arith.constant dense<0.000000e+00> : vector<8x32xf32>
    %156 = tpu.matmul %151, %155, %cst_79 {dimension_numbers = #tpu.dot_dimension_numbers<[1], [0], [0], [1], [0, 0, 1, 1], [], []>} : vector<8x32xf32>, vector<32x32xf32>, vector<8x32xf32> -> vector<8x32xf32>
    %157 = arith.addf %154, %156 : vector<8x32xf32>
    %158 = math.tanh %157 : vector<8x32xf32>
    %159 = arith.index_cast %c7_i32 : i32 to index
    %c0_80 = arith.constant 0 : index
    %c0_81 = arith.constant 0 : index
    %160 = vector.load %arg6[%159, %c0_80, %c0_81] : memref<8x8x32xf32, #tpu.memory_space<vmem>>, vector<1x8x32xf32>
    %161 = vector.shape_cast %160 : vector<1x8x32xf32> to vector<8x32xf32>
    %162 = vector.shape_cast %158 : vector<8x32xf32> to vector<1x8x32xf32>
    tpu.vector_store %arg6[%159, %c0_80, %c0_81], %162 {strides = array<i32>} : memref<8x8x32xf32, #tpu.memory_space<vmem>>, vector<1x8x32xf32>,
    %163 = tpu.concatenate %158, %151 in 1 : vector<8x32xf32>, vector<8x32xf32> -> vector<8x64xf32>
    %c8_i32 = arith.constant 8 : i32
    %c0_82 = arith.constant 0 : index
    %c0_83 = arith.constant 0 : index
    %164 = vector.load %arg8[%c0_82, %c0_83] : memref<8x64xf32, #tpu.memory_space<vmem>>, vector<8x64xf32>
    tpu.vector_store %arg8[%c0_82, %c0_83], %163 {strides = array<i32>} : memref<8x64xf32, #tpu.memory_space<vmem>>, vector<8x64xf32>,
    %c1_i32_84 = arith.constant 1 : i32
    %165 = arith.cmpi eq, %arg1, %c1_i32_84 : i32
    %166 = arith.extui %165 : i1 to i32
    %c0_i32_85 = arith.constant 0 : i32
    %167 = arith.cmpi ne, %166, %c0_i32_85 : i32
    scf.if %167 {
      %168 = vector.extract_strided_slice %163 {offsets = [0, 32], sizes = [8, 32], strides = [1, 1]} : vector<8x64xf32> to vector<8x32xf32>
      %c0_86 = arith.constant 0 : index
      %c0_87 = arith.constant 0 : index
      %169 = vector.load %arg7[%c0_86, %c0_87] : memref<8x32xf32, #tpu.memory_space<vmem>>, vector<8x32xf32>
      tpu.vector_store %arg7[%c0_86, %c0_87], %168 {strides = array<i32>} : memref<8x32xf32, #tpu.memory_space<vmem>>, vector<8x32xf32>,
    } else {
    }
    return
  }
  func.func @transform_0(%arg0: i32, %arg1: i32) -> (i32, i32, i32) {
    %c0_i32 = arith.constant 0 : i32
    %c0_i32_0 = arith.constant 0 : i32
    return %arg1, %arg0, %c0_i32 : i32, i32, i32
  }
  func.func @transform_1(%arg0: i32, %arg1: i32) -> (i32, i32) {
    %c0_i32 = arith.constant 0 : i32
    %c0_i32_0 = arith.constant 0 : i32
    return %arg0, %c0_i32 : i32, i32
  }
  func.func @transform_2(%arg0: i32, %arg1: i32) -> (i32, i32) {
    %c0_i32 = arith.constant 0 : i32
    %c0_i32_0 = arith.constant 0 : i32
    %c0_i32_1 = arith.constant 0 : i32
    return %c0_i32, %c0_i32_0 : i32, i32
  }
  func.func @transform_3(%arg0: i32, %arg1: i32) -> (i32, i32) {
    %c0_i32 = arith.constant 0 : i32
    %c0_i32_0 = arith.constant 0 : i32
    %c0_i32_1 = arith.constant 0 : i32
    return %c0_i32, %c0_i32_0 : i32, i32
  }
  func.func @transform_4(%arg0: i32, %arg1: i32) -> (i32, i32, i32) {
    %c0_i32 = arith.constant 0 : i32
    %c0_i32_0 = arith.constant 0 : i32
    return %arg1, %arg0, %c0_i32 : i32, i32, i32
  }
  func.func @transform_5(%arg0: i32, %arg1: i32) -> (i32, i32) {
    %c0_i32 = arith.constant 0 : i32
    %c0_i32_0 = arith.constant 0 : i32
    return %arg0, %c0_i32 : i32, i32
  }
}

</mosaic_0001>

<bundles_post_ra>
// kernel: tpu_custom_call.1
= control target key start
LH: loop header
LB: loop body
LE: loop exit
PB: predicated region body
PF: predicated region fallthrough
CT: control target
= control target key end

     0   :  { %s3392_s0 = inlined_call_operand.hbm [shape: f32[16,8,64], index: 0, kind: input, shape index: {}]   ;;  %s3393_s1 = inlined_call_operand.hbm [shape: f32[8,64], index: 1, kind: input, shape index: {}]   ;;  %s3394_s2 = inlined_call_operand.hbm [shape: f32[64,64], index: 2, kind: input, shape index: {}]   ;;  %s3395_s3 = inlined_call_operand.hbm [shape: f32[32,32], index: 3, kind: input, shape index: {}]   ;;  %s3396_s4 = inlined_call_operand.hbm [shape: f32[16,8,32], index: 4, kind: output, shape index: {0}]   ;;  %s3397_s5 = inlined_call_operand.hbm [shape: f32[8,32], index: 5, kind: output, shape index: {1}]  }
   0x1   :  { %3404 = sst [smem:[#allocation19_spill]] %s3393_s1 }
   0x2   :  { %11 = vsyncpa [#allocation4], 0 }
   0x3   :  { %13 = vsyncpa [#allocation4 + $0x1], 0 }
   0x4   :  { %14 = vsyncpa [#allocation7], 0 }
   0x5   :  { %15 = vsyncpa [#allocation10], 0 }
   0x6   :  { %16 = vsyncpa [#allocation5], 0 }
   0x7   :  { %18 = vsyncpa [#allocation5 + $0x1], 0 }
   0x8   :  { %19 = vsyncpa [#allocation13], 0  ;;  %s2867_s18 = smov 0   ;;  %s2869_s19 = smov 0  }
   0x9   :  { %s2871_s20 = smov 0   ;;  %s2873_s21 = smov 0  }
   0xa   :  { %s2875_s22 = smov 0   ;;  %s2877_s23 = smov 0  }
   0xb LB: > { %s1906_s24 = sadd.s32 4294967295, %s2819_s23   ;;  %s1907_s25 = sadd.s32 4294967294, %s2819_s23   ;;  %s2819_s23 = sphi %s2877_s23, %s25_s23   ;;  %s2815_s22 = sphi %s2875_s22, %s3427_s22   ;;  %s2811_s21 = sphi %s2873_s21, %s3426_s21   ;;  %s2807_s20 = sphi %s2871_s20, %s3425_s20   ;;  %s2803_s19 = sphi %s2869_s19, %s3424_s19   ;;  %s2799_s18 = sphi %s2867_s18, %s3423_s18  }
   0xc   : > { %p59_p0 = scmp.ne.s32.totalorder %s2803_s19, %s2799_s18  ;;  %p2901_p1 = scmp.eq.s32.totalorder %s1906_s24, 0 }
   0xd   : > { %p2905_p2 = scmp.eq.s32.totalorder %s1906_s24, 1  ;;  %p159_p3 = scmp.eq.s32.totalorder %s1907_s25, 1 }
   0xe   : > { %s3405_s26 = scalar_select %p2901_p1, 1, 0 }
   0xf   : > { %s3406_s27 = scalar_select %p2905_p2, 1, 0 }
  0x10   : > { %p2911_p4 = por %p2901_p1, %p59_p0  ;;  %p1908_p5 = scmp.ge.s32.totalorder %s2819_s23, 1 }
  0x11   : > { %p2916_p6 = por %p159_p3, %p59_p0  ;;  %p192_p7 = scmp.lt.s32.totalorder %s2819_s23, 3 }
  0x12   : > { %s3407_s28 = scalar_select %p2911_p4, 1, 0 }
  0x13   : > { %s3408_s29 = scalar_select %p2916_p6, 1, 0 }
  0x14   : > { %p2921_p8 = pnand %p1908_p5, %p192_p7  ;;  %s2821_s6 = smov [#allocation6]  }
  0x15   : > { %s207_s7 = sshll.u32 %s2821_s6, 4  ;;  %s2822_s8 = smov [#allocation8]   ;;  %s208_s7 = int_to_ptr.vmem [resolvable:$true] %s207_s7 }
  0x16   : > { %s3409_s30 = scalar_select %p2921_p8, 1, 0 }
  0x17   : > { %p2479_p10 = pneg %p2921_p8  ;;  %s217_s9 = sshll.u32 %s2822_s8, 4  ;;  %s2934_s9 = int_to_ptr.vmem [resolvable:$true] %s217_s9 }
  0x18   : > { %s2823_s11 = smov [#allocation9]   ;;  %s3411_s1 = sld [smem:[#allocation19_spill]] }
  0x19   : > { %p2930_p11 = pnand %p2479_p10, %p2901_p1  ;;  %s2936_s12 = sshll.u32 %s2823_s11, 4  ;;  %s231_s12 = int_to_ptr.vmem [resolvable:$true] %s2936_s12 }
  0x1b   : > { %p2946_p13 = pneg %p2930_p11 }
  0x1e   : > { %s2585_s15 = scalar_lea.hbm %s3411_s1, 128 }
  0x1f   : > { %p2586_p12 = scmp.ne.s32.totalorder %s3411_s1, %s2585_s15  ;;  %p2592_p5 = scmp.lt.u32.totalorder %s2585_s15, %s3411_s1 }
  0x21   : > { %p2588_p0 = pnand %p2946_p13, %p2586_p12 }
  0x23   : > { %p2589_p3 = pneg %p2588_p0 }
  0x25   : > { %p2594_p7 = pnand %p2592_p5, %p2589_p3 }
  0x27   : > { %2597 = shalt.err (!%p2594_p7)
}
  0x28   : > { %s2598_s8 = scalar_lea.vmem %s208_s7, 128  ;;  %p2606_p1 = scmp.lt.s32.totalorder %s208_s7, %s208_s7 }
  0x29   : > { %p2599_p10 = scmp.ne.s32.totalorder %s208_s7, %s2598_s8  ;;  %p2607_p4 = scmp.lt.s32.totalorder %s2598_s8, %s2598_s8 }
  0x2b   : > { %p2601_p9 = pnand %p2599_p10, %p2946_p13  ;;  %p2608_p8 = por %p2607_p4, %p2606_p1 }
  0x2d   : > { %p2602_p6 = pneg %p2601_p9 }
  0x2f   : > { %p2609_p2 = pnand %p2608_p8, %p2602_p6 }
  0x31   : > { %2612 = shalt.err (!%p2609_p2)
}
  0x32   : > { %2482 = dma.hbm_to_vmem [thread:$0]  (!%p2930_p11), %s3411_s1, 128, %s208_s7, [#allocation7]  }
  0x33   : > { %s2613_s16 = scalar_lea.hbm %s3394_s2, 1024 }
  0x34   : > { %p2614_p9 = scmp.ne.s32.totalorder %s3394_s2, %s2613_s16  ;;  %p2620_p2 = scmp.lt.u32.totalorder %s2613_s16, %s3394_s2 }
  0x36   : > { %p2616_p12 = pnand %p2614_p9, %p2946_p13 }
  0x38   : > { %p2617_p1 = pneg %p2616_p12 }
  0x3a   : > { %p2622_p4 = pnand %p2620_p2, %p2617_p1 }
  0x3c   : > { %2625 = shalt.err (!%p2622_p4)
}
  0x3d   : > { %s2626_s7 = scalar_lea.vmem %s2934_s9, 1024  ;;  %p2634_p3 = scmp.lt.s32.totalorder %s2934_s9, %s2934_s9 }
  0x3e   : > { %p2627_p6 = scmp.ne.s32.totalorder %s2934_s9, %s2626_s7  ;;  %p2635_p5 = scmp.lt.s32.totalorder %s2626_s7, %s2626_s7 }
  0x40   : > { %p2629_p8 = pnand %p2627_p6, %p2946_p13  ;;  %p2636_p7 = por %p2635_p5, %p2634_p3 }
  0x42   : > { %p2630_p0 = pneg %p2629_p8 }
  0x44   : > { %p2637_p10 = pnand %p2636_p7, %p2630_p0 }
  0x46   : > { %2640 = shalt.err (!%p2637_p10)
}
  0x47   : > { %s3403_s11 = smov 128   ;;  %s2825_s13 = smov 8  }
  0x48   : > { %2485 = dma.hbm_to_vmem [thread:$0]  (!%p2930_p11), %s3394_s2, 1024, %s2934_s9, [#allocation7], %s3403_s11, %s3403_s11, %s2825_s13  }
  0x49   : > { %s2641_s25 = scalar_lea.hbm %s3395_s3, 512 }
  0x4a   : > { %p2642_p9 = scmp.ne.s32.totalorder %s3395_s3, %s2641_s25  ;;  %p2648_p2 = scmp.lt.u32.totalorder %s2641_s25, %s3395_s3 }
  0x4c   : > { %p2644_p12 = pnand %p2642_p9, %p2946_p13 }
  0x4e   : > { %p2645_p1 = pneg %p2644_p12 }
  0x50   : > { %p2650_p4 = pnand %p2648_p2, %p2645_p1 }
  0x52   : > { %2653 = shalt.err (!%p2650_p4)
}
  0x53   : > { %s2654_s14 = scalar_lea.vmem %s231_s12, 512  ;;  %p2662_p3 = scmp.lt.s32.totalorder %s231_s12, %s231_s12 }
  0x54   : > { %p2655_p6 = scmp.ne.s32.totalorder %s231_s12, %s2654_s14  ;;  %p2663_p5 = scmp.lt.s32.totalorder %s2654_s14, %s2654_s14 }
  0x56   : > { %p2657_p8 = pnand %p2655_p6, %p2946_p13  ;;  %p2664_p7 = por %p2663_p5, %p2662_p3 }
  0x58   : > { %p2658_p0 = pneg %p2657_p8 }
  0x5a   : > { %p2665_p10 = pnand %p2664_p7, %p2658_p0 }
  0x5c   : > { %2668 = shalt.err (!%p2665_p10)
}
  0x5d   : > { %2488 = dma.hbm_to_vmem [thread:$0]  (!%p2930_p11), %s3395_s3, 512, %s231_s12, [#allocation10], %s3403_s11, %s3403_s11, %s2825_s13  }
  0x5e   : > { %s46_s24 = sadd.s32 1, %s2807_s20  ;;  %s34_s10 = sadd.s32 1, %s2815_s22 }
  0x5f   : > { %p53_p13 = scmp.ne.s32.totalorder %s2807_s20, %s2803_s19  ;;  %p35_p9 = scmp.ge.s32.totalorder %s34_s10, 2 }
  0x60   : > { %p54_p12 = scmp.eq.s32.totalorder %s2819_s23, 0  ;;  %p3413_p1 = scmp.ne.s32.totalorder %s3406_s27, 0 }
  0x61   : > { %p2500_p4 = scmp.lt.s32.totalorder %s2819_s23, 2  ;;  %s3429_s10 = smov (%p35_p9, %s34_s10), 0 }
  0x62   : > { %p3017_p2 = por %p3413_p1, %p53_p13  ;;  %p55_p6 = por %p54_p12, %p53_p13 }
  0x63   : > { %s244_s16 = sand.u32 1, %s2807_s20   ;;  %s41_s17 = ssub.s32 %s2815_s22, %s3429_s10 }
  0x64   : > { %p44_p8 = scmp.eq.s32.totalorder %s41_s17, 0  ;;  %s1913_s12 = sshll.u32 %s244_s16, 6 }
  0x65   : > { %s1961_s25 = sshll.u32 %s2815_s22, 10  ;;  %s248_s1 = scalar_lea.vmem [#allocation3], %s1913_s12 }
  0x66   : > { %s3029_s6 = scalar_select %p44_p8, %s2807_s20, %s46_s24  }
  0x67   : > { %s3034_s14 = scalar_lea.hbm %s3392_s0, %s1961_s25  ;;  %s256_s9 = sshll.u32 %s248_s1, 4  ;;  %s3036_s9 = int_to_ptr.vmem [resolvable:$true] %s256_s9 }
  0x68   : > { %p3040_p11 = pnand %p2500_p4, %p55_p6  ;;  %s3044_s24 = scalar_lea.sflag [#allocation4], %s244_s16 }
  0x69   : > { %s2669_s8 = scalar_lea.hbm %s3034_s14, 1024  ;;  %s2674_s7 = scalar_lea.hbm %s3392_s0, 2048 }
  0x6a   : > { %p2670_p0 = scmp.ne.s32.totalorder %s3034_s14, %s2669_s8  ;;  %p2671_p3 = pneg %p3040_p11 }
  0x6b   : > { %p2675_p10 = scmp.lt.u32.totalorder %s3034_s14, %s3392_s0  ;;  %p2676_p13 = scmp.lt.u32.totalorder %s2674_s7, %s2669_s8 }
  0x6c   : > { %p2672_p5 = pnand %p2671_p3, %p2670_p0  ;;  %p2678_p12 = scmp.lt.u32.totalorder %s2669_s8, %s3034_s14 }
  0x6d   : > { %p2677_p9 = por %p2676_p13, %p2675_p10 }
  0x6e   : > { %p2673_p7 = pneg %p2672_p5 }
  0x6f   : > { %p2679_p1 = por %p2678_p12, %p2677_p9 }
  0x71   : > { %p2680_p4 = pnand %p2679_p1, %p2673_p7 }
  0x73   : > { %2683 = shalt.err (!%p2680_p4)
}
  0x74   : > { %s2684_s16 = scalar_lea.vmem %s3036_s9, 1024  ;;  %s2826_s12 = smov [#allocation3]  }
  0x75   : > { %p2685_p6 = scmp.ne.s32.totalorder %s3036_s9, %s2684_s16  ;;  %s2689_s25 = sshll.u32 %s2826_s12, 4  ;;  %s2690_s25 = int_to_ptr.vmem [resolvable:$false] %s2689_s25 }
  0x76   : > { %s2691_s11 = scalar_lea.vmem %s2690_s25, 2048  ;;  %p2692_p5 = scmp.lt.s32.totalorder %s3036_s9, %s2690_s25 }
  0x77   : > { %p2687_p8 = pnand %p2685_p6, %p2671_p3  ;;  %p2693_p10 = scmp.lt.s32.totalorder %s2691_s11, %s2684_s16 }
  0x79   : > { %p2688_p0 = pneg %p2687_p8  ;;  %p2694_p13 = por %p2693_p10, %p2692_p5 }
  0x7b   : > { %p2695_p9 = pnand %p2694_p13, %p2688_p0 }
  0x7d   : > { %2698 = shalt.err (!%p2695_p9)
}
  0x7e   : > { %s3416_s8 = smov 128   ;;  %p3417_p3 = scmp.ne.s32.totalorder %s3409_s30, 0 }
  0x7f   : > { %2492 = dma.hbm_to_vmem [thread:$0]  (!%p3040_p11), %s3034_s14, 1024, %s3036_s9, %s3044_s24, %s3416_s8, %s3416_s8, %s2825_s13  }
  0x80   : > { %268 = sbr.rel (%p3417_p3) target bundleno = 5694 (0x163e), region = 36  ;;  %s3078_s7 = sand.u32 (!%p3417_p3), 1, %s2803_s19  }
  0x81   : > { %s1917_s1 = sshll.u32 (!%p3417_p3), %s3078_s7, 6  ;;  %s271_s16 = scalar_lea.sflag (!%p3417_p3), [#allocation4], %s3078_s7 }
  0x82   : > { %s3082_s12 = scalar_lea.vmem (!%p3417_p3), [#allocation3], %s1917_s1  ;;  %p3418_p7 = scmp.ne.s32.totalorder (!%p3417_p3), %s3407_s28, 0 }
  0x87   : > { %2778 = dma.done.wait (%p3418_p7), %s271_s16, 1024  }
  0x88   : > { %2780 = vsyncadd (%p3418_p7), %s271_s16, 4294966272  ;;  %p3419_p11 = scmp.ne.s32.totalorder %s3405_s26, 0 }
  0x8a   : > { %2782 = dma.done.wait (%p3419_p11), [#allocation7], 1152  }
  0x8b   : > { %2784 = vsyncadd (%p3419_p11), [#allocation7], 4294966144 }
  0x8c   : > { %2786 = dma.done.wait (%p3419_p11), [#allocation10], 512  }
  0x8d   : > { %2788 = vsyncadd (%p3419_p11), [#allocation10], 4294966784  ;;  %s3096_s30 = scalar_lea.vmem [#allocation11], %s1917_s1  ;;  %p1922_p12 = scmp.ne.s32.totalorder %s2811_s21, 0 }
  0x8e   : > { %v319_v0 = vld [vmem:[#allocation6] sm:$0xff] (!%p1922_p12)  ;;  %vm320_vm0 = vcmask (!%p1922_p12), 523264  }
  0x8f   : > { %318 = sbr.rel (%p1922_p12) target bundleno = 150 (0x96), region = 56  ;;  %321 = vst.msk [vmem:[#allocation2] sm:$0xff] (!%p1922_p12), %vm320_vm0, %v319_v0 }
  0x96 PF: > { %v324_v1 = vld [vmem:[#allocation8] sm:$0xff]  ;;  %v325_v2 = vld [vmem:[#allocation8 + $0x8] sm:$0xff]  ;;  %v326_v3 = vld [vmem:[#allocation8 + $0x10] sm:$0xff]  ;;  %v2827_v4 = vmov 0.0|0.0   ;;  %vm2828_vm1 = vmmov 0   ;;  %v2829_v7 = vmov 0.0  }
  0x97   : > { %2315 = vmatprep.subr.bf16.mxu0 %v2827_v4  ;;  %v3100_v5 = vpack.c.bf16 %v325_v2, %v324_v1  ;;  %v327_v6 = vld [vmem:[#allocation8 + $0x18] sm:$0xff]  ;;  %2091 = vmatprep.mubr.msk.f32.mxu0 %vm2828_vm1, %v2829_v7  ;;  %v407_v9 = vld [vmem:[#allocation9] sm:$0xff]  ;;  %v408_v10 = vld [vmem:[#allocation9 + $0x8] sm:$0xff]  ;;  %vm332_vm2 = vcmask 523264   ;;  %vm411_vm3 = vcmask 261120   ;;  %s2830_s26 = smov 32  }
  0x98   : > { %2327 = vmatprep.subr.bf16.mxu1 %v2827_v4  ;;  %2102 = vmatprep.mubr.msk.f32.mxu1 %vm2828_vm1, %v2829_v7  ;;  %v3108_v8 = vpack.c.bf16 %v327_v6, %v326_v3  ;;  %v328_v11 = vld [vmem:[#allocation8 + $0x20] sm:$0xff]  ;;  %v329_v12 = vld [vmem:[#allocation8 + $0x28] sm:$0xff]  ;;  %v3111_v13 = vpack.c.bf16 %v408_v10, %v407_v9  ;;  %v330_v15 = vld [vmem:[#allocation8 + $0x30] sm:$0xff]  ;;  %s2831_s28 = smov 96   ;;  %p1953_p1 = scmp.ne.s32.totalorder %s2811_s21, 1 }
  0x99   : > { %2317 = vmatpush3.bf16.msra.mxu0 %v3100_v5  ;;  %v3115_v14 = vpack.c.bf16 %v329_v12, %v328_v11  ;;  %v331_v16 = vld [vmem:[#allocation8 + $0x38] sm:$0xff]  ;;  %v322_v18 = vld [vmem:[#allocation2] sm:$0xff]  ;;  %v1925_v34 = vld [vmem:[%s3082_s12 + $0x8] sm:$0xff]  ;;  %s2832_s13 = smov (!%p1953_p1), 96  }
  0x9a   : > { %2318 = vmatprep.subr.bf16.mxu0 %v2827_v4  ;;  %2329 = vmatpush3.bf16.msra.mxu1 %v3111_v13  ;;  %v3120_v17 = vpack.c.bf16 %v331_v16, %v330_v15  ;;  %v409_v19 = vld [vmem:[#allocation9 + $0x10] sm:$0xff]  ;;  %v410_v20 = vld [vmem:[#allocation9 + $0x18] sm:$0xff]  ;;  %v1929_v46 = vld [vmem:[%s3082_s12 + $0x10] sm:$0xff] }
  0x9b   : > { %2330 = vmatprep.subr.bf16.mxu1 %v2827_v4  ;;  %v3130_v21 = vpack.c.bf16 %v410_v20, %v409_v19  ;;  %v323_v22 = vld [vmem:[%s3082_s12] sm:$0xff]  ;;  %v1933_v58 = vld [vmem:[%s3082_s12 + $0x18] sm:$0xff] }
  0x9c   : > { %v1937_v10 = vld [vmem:[%s3082_s12 + $0x20] sm:$0xff] }
  0x9d   : > { %2320 = vmatpush3.bf16.msra.mxu0 %v3108_v8 }
  0x9e   : > { %2321 = vmatprep.subr.bf16.mxu0 %v2827_v4  ;;  %2332 = vmatpush3.bf16.msra.mxu1 %v3130_v21 }
  0x9f   : > { %2333 = vmatprep.subr.bf16.mxu1 %v2827_v4 }
  0xa1   : > { %2323 = vmatpush3.bf16.msra.mxu0 %v3115_v14 }
  0xa2   : > { %2324 = vmatprep.subr.bf16.mxu0 %v2827_v4 }
  0xa5   : > { %2326 = vmatpush3.bf16.msra.mxu0 %v3120_v17 }
  0xa6   : > { %2345 = vmatprep.subr.bf16.mxu0 %v2827_v4 }
  0xa8   : > { %2092 = vmatmul.mubr.msk.f32.vlgmr.msra.gmra.mrb[0].mxu0 %vm332_vm2, %v322_v18 }
  0xa9   : > { %2347 = vmatpush3.bf16.msra.mxu0 %v3111_v13  ;;  %2132 = vmatprep.mubr.msk.f32.mxu0 %vm2828_vm1, %v2829_v7 }
  0xaa   : > { %2348 = vmatprep.subr.bf16.mxu0 %v2827_v4 }
  0xad   : > { %2350 = vmatpush3.bf16.msra.mxu0 %v3130_v21 }
  0xae   : > { %2351 = vmatprep.subr.bf16.mxu0 %v2827_v4 }
 0x17b   : > { %v402_v23 = vpop.f32.mrb[0].mxu0 }
 0x17c   : > { %v406_v24 = vadd.f32 %v402_v23, %v323_v22  ;;  %v2093_v25 = vpop.f32.mrb[1].mxu0 }
 0x17e   : > { %496 = vrot.lane.b32.xlu1 %v406_v24, %s2830_s26  ;;  %2103 = vmatmul.mubr.msk.f32.vlgmr.msra.gmra.mrb[0].mxu1 %vm411_vm3, %v406_v24 }
 0x17f   : > { %2335 = vmatpush3.bf16.msra.mxu1 %v3100_v5  ;;  %2121 = vmatprep.mubr.msk.f32.mxu1 %vm2828_vm1, %v2829_v7 }
 0x180   : > { %2336 = vmatprep.subr.bf16.mxu1 %v2827_v4 }
 0x183   : > { %2338 = vmatpush3.bf16.msra.mxu1 %v3108_v8 }
 0x184   : > { %2339 = vmatprep.subr.bf16.mxu1 %v2827_v4 }
 0x187   : > { %2341 = vmatpush3.bf16.msra.mxu1 %v3115_v14 }
 0x188   : > { %2342 = vmatprep.subr.bf16.mxu1 %v2827_v4 }
 0x18b   : > { %2344 = vmatpush3.bf16.msra.mxu1 %v3120_v17 }
 0x18c   : > { %2363 = vmatprep.subr.bf16.mxu1 %v2827_v4 }
 0x1f0   : > { %v497_v31 = vpop.permute.xlu1 %496 }
 0x251   : > { %v481_v26 = vpop.f32.mrb[0].mxu1 }
 0x252   : > { %486 = vrot.lane.b32.xlu0 %v481_v26, %s2830_s26  ;;  %v2104_v27 = vpop.f32.mrb[1].mxu1  ;;  %v1941_v26 = vld [vmem:[%s3082_s12 + $0x28] sm:$0xff] }
 0x2c4   : > { %v487_v28 = vpop.permute.xlu0 %486 }
 0x2c5   : > { %v489_v29 = vadd.f32 %v487_v28, %v406_v24 }
 0x2c7   : > { %2569 = vtanh.f32 %v489_v29 }
 0x2d1   : > { %v2570_v30 = vpop.eup %2569 }
 0x2d2   : > { %492 = vrot.lane.b32.xlu0 %v2570_v30, %s2831_s28 }
 0x344   : > { %v493_v32 = vpop.permute.xlu0 %492 }
 0x345   : > { %495 = vst.msk [vmem:[%s3096_s30] sm:$0xff] %vm411_vm3, %v493_v32  ;;  %v499_v33 = vsel %vm411_vm3, %v493_v32, %v497_v31 }
 0x346   : > { %2122 = vmatmul.mubr.msk.f32.vlgmr.msra.gmra.mrb[2].mxu1 %vm332_vm2, %v499_v33 }
 0x347   : > { %2365 = vmatpush3.bf16.msra.mxu1 %v3111_v13  ;;  %2162 = vmatprep.mubr.msk.f32.mxu1 %vm2828_vm1, %v2829_v7 }
 0x348   : > { %2366 = vmatprep.subr.bf16.mxu1 %v2827_v4 }
 0x34b   : > { %2368 = vmatpush3.bf16.msra.mxu1 %v3130_v21 }
 0x34c   : > { %2369 = vmatprep.subr.bf16.mxu1 %v2827_v4 }
 0x419   : > { %v579_v35 = vpop.f32.mrb[2].mxu1 }
 0x41a   : > { %v583_v36 = vadd.f32 %v1925_v34, %v579_v35  ;;  %v2123_v37 = vpop.f32.mrb[3].mxu1 }
 0x41c   : > { %2133 = vmatmul.mubr.msk.f32.vlgmr.msra.gmra.mrb[2].mxu0 %vm411_vm3, %v583_v36 }
 0x41d   : > { %2353 = vmatpush3.bf16.msra.mxu0 %v3100_v5  ;;  %2151 = vmatprep.mubr.msk.f32.mxu0 %vm2828_vm1, %v2829_v7 }
 0x41e   : > { %2354 = vmatprep.subr.bf16.mxu0 %v2827_v4 }
 0x421   : > { %2356 = vmatpush3.bf16.msra.mxu0 %v3108_v8 }
 0x422   : > { %2357 = vmatprep.subr.bf16.mxu0 %v2827_v4 }
 0x425   : > { %2359 = vmatpush3.bf16.msra.mxu0 %v3115_v14 }
 0x426   : > { %2360 = vmatprep.subr.bf16.mxu0 %v2827_v4 }
 0x429   : > { %2362 = vmatpush3.bf16.msra.mxu0 %v3120_v17 }
 0x42a   : > { %2381 = vmatprep.subr.bf16.mxu0 %v2827_v4 }
 0x4ef   : > { %v657_v38 = vpop.f32.mrb[2].mxu0 }
 0x4f0   : > { %662 = vrot.lane.b32.xlu1 %v657_v38, %s2830_s26  ;;  %v2134_v39 = vpop.f32.mrb[3].mxu0  ;;  %v1945_v38 = vld [vmem:[%s3082_s12 + $0x30] sm:$0xff] }
 0x4f4   : > { %673 = vrot.lane.b32.xlu1 %v583_v36, %s2830_s26 }
 0x562   : > { %v663_v40 = vpop.permute.xlu1 %662 }
 0x563   : > { %v665_v41 = vadd.f32 %v663_v40, %v583_v36 }
 0x565   : > { %2571 = vtanh.f32 %v665_v41 }
 0x566   : > { %v674_v43 = vpop.permute.xlu1 %673 }
 0x56f   : > { %v2572_v42 = vpop.eup %2571 }
 0x570   : > { %668 = vrot.lane.b32.xlu0 %v2572_v42, %s2831_s28 }
 0x5e2   : > { %v669_v44 = vpop.permute.xlu0 %668 }
 0x5e3   : > { %1928 = vst.msk [vmem:[%s3096_s30 + $0x8] sm:$0xff] %vm411_vm3, %v669_v44  ;;  %v676_v45 = vsel %vm411_vm3, %v669_v44, %v674_v43 }
 0x5e4   : > { %2152 = vmatmul.mubr.msk.f32.vlgmr.msra.gmra.mrb[4].mxu0 %vm332_vm2, %v676_v45 }
 0x5e5   : > { %2383 = vmatpush3.bf16.msra.mxu0 %v3111_v13  ;;  %2192 = vmatprep.mubr.msk.f32.mxu0 %vm2828_vm1, %v2829_v7 }
 0x5e6   : > { %2384 = vmatprep.subr.bf16.mxu0 %v2827_v4 }
 0x5e9   : > { %2386 = vmatpush3.bf16.msra.mxu0 %v3130_v21 }
 0x5ea   : > { %2387 = vmatprep.subr.bf16.mxu0 %v2827_v4 }
 0x6b7   : > { %v756_v47 = vpop.f32.mrb[4].mxu0 }
 0x6b8   : > { %v760_v48 = vadd.f32 %v1929_v46, %v756_v47  ;;  %v2153_v49 = vpop.f32.mrb[5].mxu0 }
 0x6ba   : > { %2163 = vmatmul.mubr.msk.f32.vlgmr.msra.gmra.mrb[4].mxu1 %vm411_vm3, %v760_v48 }
 0x6bb   : > { %2371 = vmatpush3.bf16.msra.mxu1 %v3100_v5  ;;  %2181 = vmatprep.mubr.msk.f32.mxu1 %vm2828_vm1, %v2829_v7 }
 0x6bc   : > { %2372 = vmatprep.subr.bf16.mxu1 %v2827_v4 }
 0x6bf   : > { %2374 = vmatpush3.bf16.msra.mxu1 %v3108_v8 }
 0x6c0   : > { %2375 = vmatprep.subr.bf16.mxu1 %v2827_v4 }
 0x6c3   : > { %2377 = vmatpush3.bf16.msra.mxu1 %v3115_v14 }
 0x6c4   : > { %2378 = vmatprep.subr.bf16.mxu1 %v2827_v4 }
 0x6c7   : > { %2380 = vmatpush3.bf16.msra.mxu1 %v3120_v17 }
 0x6c8   : > { %2399 = vmatprep.subr.bf16.mxu1 %v2827_v4 }
 0x78d   : > { %v834_v50 = vpop.f32.mrb[4].mxu1 }
 0x78e   : > { %839 = vrot.lane.b32.xlu0 %v834_v50, %s2830_s26  ;;  %v2164_v51 = vpop.f32.mrb[5].mxu1 }
 0x792   : > { %850 = vrot.lane.b32.xlu0 %v760_v48, %s2830_s26 }
 0x800   : > { %v840_v52 = vpop.permute.xlu0 %839 }
 0x801   : > { %v842_v53 = vadd.f32 %v840_v52, %v760_v48 }
 0x803   : > { %2573 = vtanh.f32 %v842_v53 }
 0x804   : > { %v851_v55 = vpop.permute.xlu0 %850 }
 0x80d   : > { %v2574_v54 = vpop.eup %2573 }
 0x80e   : > { %845 = vrot.lane.b32.xlu1 %v2574_v54, %s2831_s28 }
 0x880   : > { %v846_v56 = vpop.permute.xlu1 %845 }
 0x881   : > { %1932 = vst.msk [vmem:[%s3096_s30 + $0x10] sm:$0xff] %vm411_vm3, %v846_v56  ;;  %v853_v57 = vsel %vm411_vm3, %v846_v56, %v851_v55 }
 0x882   : > { %2182 = vmatmul.mubr.msk.f32.vlgmr.msra.gmra.mrb[6].mxu1 %vm332_vm2, %v853_v57 }
 0x883   : > { %2401 = vmatpush3.bf16.msra.mxu1 %v3111_v13  ;;  %2222 = vmatprep.mubr.msk.f32.mxu1 %vm2828_vm1, %v2829_v7 }
 0x884   : > { %2402 = vmatprep.subr.bf16.mxu1 %v2827_v4 }
 0x887   : > { %2404 = vmatpush3.bf16.msra.mxu1 %v3130_v21 }
 0x888   : > { %2405 = vmatprep.subr.bf16.mxu1 %v2827_v4 }
 0x955   : > { %v933_v59 = vpop.f32.mrb[6].mxu1 }
 0x956   : > { %v937_v60 = vadd.f32 %v1933_v58, %v933_v59  ;;  %v2183_v61 = vpop.f32.mrb[7].mxu1 }
 0x958   : > { %2193 = vmatmul.mubr.msk.f32.vlgmr.msra.gmra.mrb[6].mxu0 %vm411_vm3, %v937_v60 }
 0x959   : > { %2389 = vmatpush3.bf16.msra.mxu0 %v3100_v5  ;;  %2211 = vmatprep.mubr.msk.f32.mxu0 %vm2828_vm1, %v2829_v7 }
 0x95a   : > { %2390 = vmatprep.subr.bf16.mxu0 %v2827_v4 }
 0x95d   : > { %2392 = vmatpush3.bf16.msra.mxu0 %v3108_v8 }
 0x95e   : > { %2393 = vmatprep.subr.bf16.mxu0 %v2827_v4 }
 0x961   : > { %2395 = vmatpush3.bf16.msra.mxu0 %v3115_v14 }
 0x962   : > { %2396 = vmatprep.subr.bf16.mxu0 %v2827_v4 }
 0x965   : > { %2398 = vmatpush3.bf16.msra.mxu0 %v3120_v17 }
 0x966   : > { %2417 = vmatprep.subr.bf16.mxu0 %v2827_v4 }
 0xa2b   : > { %v1011_v62 = vpop.f32.mrb[6].mxu0 }
 0xa2c   : > { %1016 = vrot.lane.b32.xlu1 %v1011_v62, %s2830_s26  ;;  %v2194_v63 = vpop.f32.mrb[7].mxu0 }
 0xa30   : > { %1027 = vrot.lane.b32.xlu1 %v937_v60, %s2830_s26 }
 0xa9e   : > { %v1017_v0 = vpop.permute.xlu1 %1016 }
 0xa9f   : > { %v1019_v1 = vadd.f32 %v1017_v0, %v937_v60 }
 0xaa1   : > { %2575 = vtanh.f32 %v1019_v1 }
 0xaa2   : > { %v1028_v3 = vpop.permute.xlu1 %1027 }
 0xaab   : > { %v2576_v2 = vpop.eup %2575 }
 0xaac   : > { %1022 = vrot.lane.b32.xlu0 %v2576_v2, %s2831_s28 }
 0xb1e   : > { %v1023_v6 = vpop.permute.xlu0 %1022 }
 0xb1f   : > { %1936 = vst.msk [vmem:[%s3096_s30 + $0x18] sm:$0xff] %vm411_vm3, %v1023_v6  ;;  %v1030_v9 = vsel %vm411_vm3, %v1023_v6, %v1028_v3 }
 0xb20   : > { %2212 = vmatmul.mubr.msk.f32.vlgmr.msra.gmra.mrb[8].mxu0 %vm332_vm2, %v1030_v9 }
 0xb21   : > { %2419 = vmatpush3.bf16.msra.mxu0 %v3111_v13  ;;  %2252 = vmatprep.mubr.msk.f32.mxu0 %vm2828_vm1, %v2829_v7 }
 0xb22   : > { %2420 = vmatprep.subr.bf16.mxu0 %v2827_v4 }
 0xb25   : > { %2422 = vmatpush3.bf16.msra.mxu0 %v3130_v21 }
 0xb26   : > { %2423 = vmatprep.subr.bf16.mxu0 %v2827_v4 }
 0xbf3   : > { %v1110_v11 = vpop.f32.mrb[8].mxu0 }
 0xbf4   : > { %v1114_v12 = vadd.f32 %v1937_v10, %v1110_v11  ;;  %v2213_v15 = vpop.f32.mrb[9].mxu0 }
 0xbf6   : > { %2223 = vmatmul.mubr.msk.f32.vlgmr.msra.gmra.mrb[8].mxu1 %vm411_vm3, %v1114_v12 }
 0xbf7   : > { %2407 = vmatpush3.bf16.msra.mxu1 %v3100_v5  ;;  %2241 = vmatprep.mubr.msk.f32.mxu1 %vm2828_vm1, %v2829_v7 }
 0xbf8   : > { %2408 = vmatprep.subr.bf16.mxu1 %v2827_v4 }
 0xbfb   : > { %2410 = vmatpush3.bf16.msra.mxu1 %v3108_v8 }
 0xbfc   : > { %2411 = vmatprep.subr.bf16.mxu1 %v2827_v4 }
 0xbff   : > { %2413 = vmatpush3.bf16.msra.mxu1 %v3115_v14 }
 0xc00   : > { %2414 = vmatprep.subr.bf16.mxu1 %v2827_v4 }
 0xc03   : > { %2416 = vmatpush3.bf16.msra.mxu1 %v3120_v17 }
 0xc04   : > { %2435 = vmatprep.subr.bf16.mxu1 %v2827_v4 }
 0xcc9   : > { %v1188_v16 = vpop.f32.mrb[8].mxu1 }
 0xcca   : > { %1193 = vrot.lane.b32.xlu0 %v1188_v16, %s2830_s26  ;;  %v2224_v18 = vpop.f32.mrb[9].mxu1 }
 0xcce   : > { %1204 = vrot.lane.b32.xlu0 %v1114_v12, %s2830_s26 }
 0xd3c   : > { %v1194_v19 = vpop.permute.xlu0 %1193 }
 0xd3d   : > { %v1196_v20 = vadd.f32 %v1194_v19, %v1114_v12 }
 0xd3f   : > { %2577 = vtanh.f32 %v1196_v20 }
 0xd40   : > { %v1205_v23 = vpop.permute.xlu0 %1204 }
 0xd49   : > { %v2578_v22 = vpop.eup %2577 }
 0xd4a   : > { %1199 = vrot.lane.b32.xlu1 %v2578_v22, %s2831_s28 }
 0xdbc   : > { %v1200_v24 = vpop.permute.xlu1 %1199 }
 0xdbd   : > { %1940 = vst.msk [vmem:[%s3096_s30 + $0x20] sm:$0xff] %vm411_vm3, %v1200_v24  ;;  %v1207_v25 = vsel %vm411_vm3, %v1200_v24, %v1205_v23 }
 0xdbe   : > { %2242 = vmatmul.mubr.msk.f32.vlgmr.msra.gmra.mrb[10].mxu1 %vm332_vm2, %v1207_v25 }
 0xdbf   : > { %2437 = vmatpush3.bf16.msra.mxu1 %v3111_v13  ;;  %2282 = vmatprep.mubr.msk.f32.mxu1 %vm2828_vm1, %v2829_v7 }
 0xdc0   : > { %2438 = vmatprep.subr.bf16.mxu1 %v2827_v4 }
 0xdc3   : > { %2440 = vmatpush3.bf16.msra.mxu1 %v3130_v21 }
 0xdc4   : > { %2441 = vmatprep.subr.bf16.mxu1 %v2827_v4 }
 0xe91   : > { %v1287_v27 = vpop.f32.mrb[10].mxu1 }
 0xe92   : > { %v1291_v28 = vadd.f32 %v1941_v26, %v1287_v27  ;;  %v2243_v29 = vpop.f32.mrb[11].mxu1 }
 0xe94   : > { %2253 = vmatmul.mubr.msk.f32.vlgmr.msra.gmra.mrb[10].mxu0 %vm411_vm3, %v1291_v28 }
 0xe95   : > { %2425 = vmatpush3.bf16.msra.mxu0 %v3100_v5  ;;  %2271 = vmatprep.mubr.msk.f32.mxu0 %vm2828_vm1, %v2829_v7 }
 0xe96   : > { %2426 = vmatprep.subr.bf16.mxu0 %v2827_v4 }
 0xe99   : > { %2428 = vmatpush3.bf16.msra.mxu0 %v3108_v8 }
 0xe9a   : > { %2429 = vmatprep.subr.bf16.mxu0 %v2827_v4 }
 0xe9d   : > { %2431 = vmatpush3.bf16.msra.mxu0 %v3115_v14 }
 0xe9e   : > { %2432 = vmatprep.subr.bf16.mxu0 %v2827_v4 }
 0xea1   : > { %2434 = vmatpush3.bf16.msra.mxu0 %v3120_v17 }
 0xea2   : > { %2453 = vmatprep.subr.bf16.mxu0 %v2827_v4 }
 0xf67   : > { %v1365_v30 = vpop.f32.mrb[10].mxu0 }
 0xf68   : > { %1370 = vrot.lane.b32.xlu1 %v1365_v30, %s2830_s26  ;;  %v2254_v31 = vpop.f32.mrb[11].mxu0 }
 0xf6c   : > { %1381 = vrot.lane.b32.xlu1 %v1291_v28, %s2830_s26 }
 0xfda   : > { %v1371_v32 = vpop.permute.xlu1 %1370 }
 0xfdb   : > { %v1373_v33 = vadd.f32 %v1371_v32, %v1291_v28 }
 0xfdd   : > { %2579 = vtanh.f32 %v1373_v33 }
 0xfde   : > { %v1382_v35 = vpop.permute.xlu1 %1381 }
 0xfe7   : > { %v2580_v34 = vpop.eup %2579 }
 0xfe8   : > { %1376 = vrot.lane.b32.xlu0 %v2580_v34, %s2831_s28 }
0x105a   : > { %v1377_v36 = vpop.permute.xlu0 %1376 }
0x105b   : > { %1944 = vst.msk [vmem:[%s3096_s30 + $0x28] sm:$0xff] %vm411_vm3, %v1377_v36  ;;  %v1384_v37 = vsel %vm411_vm3, %v1377_v36, %v1382_v35 }
0x105c   : > { %2272 = vmatmul.mubr.msk.f32.vlgmr.msra.gmra.mrb[12].mxu0 %vm332_vm2, %v1384_v37 }
0x105d   : > { %2455 = vmatpush3.bf16.msra.mxu0 %v3111_v13  ;;  %2312 = vmatprep.mubr.msk.f32.mxu0 %vm2828_vm1, %v2829_v7 }
0x105e   : > { %2456 = vmatprep.subr.bf16.mxu0 %v2827_v4 }
0x1061   : > { %2458 = vmatpush3.bf16.msra.mxu0 %v3130_v21 }
0x112f   : > { %v1464_v39 = vpop.f32.mrb[12].mxu0 }
0x1130   : > { %v1468_v40 = vadd.f32 %v1945_v38, %v1464_v39  ;;  %v2273_v41 = vpop.f32.mrb[13].mxu0 }
0x1132   : > { %2283 = vmatmul.mubr.msk.f32.vlgmr.msra.gmra.mrb[12].mxu1 %vm411_vm3, %v1468_v40 }
0x1133   : > { %2443 = vmatpush3.bf16.msra.mxu1 %v3100_v5  ;;  %2301 = vmatprep.mubr.msk.f32.mxu1 %vm2828_vm1, %v2829_v7 }
0x1134   : > { %2444 = vmatprep.subr.bf16.mxu1 %v2827_v4 }
0x1137   : > { %2446 = vmatpush3.bf16.msra.mxu1 %v3108_v8 }
0x1138   : > { %2447 = vmatprep.subr.bf16.mxu1 %v2827_v4 }
0x113b   : > { %2449 = vmatpush3.bf16.msra.mxu1 %v3115_v14  ;;  %v1949_v14 = vld [vmem:[%s3082_s12 + $0x38] sm:$0xff] }
0x113c   : > { %2450 = vmatprep.subr.bf16.mxu1 %v2827_v4 }
0x113f   : > { %2452 = vmatpush3.bf16.msra.mxu1 %v3120_v17 }
0x1205   : > { %v1542_v13 = vpop.f32.mrb[12].mxu1 }
0x1206   : > { %1547 = vrot.lane.b32.xlu0 %v1542_v13, %s2830_s26  ;;  %v2284_v5 = vpop.f32.mrb[13].mxu1 }
0x120a   : > { %1558 = vrot.lane.b32.xlu0 %v1468_v40, %s2830_s26 }
0x1278   : > { %v1548_v7 = vpop.permute.xlu0 %1547 }
0x1279   : > { %v1550_v21 = vadd.f32 %v1548_v7, %v1468_v40 }
0x127b   : > { %2581 = vtanh.f32 %v1550_v21 }
0x127c   : > { %v1559_v42 = vpop.permute.xlu0 %1558 }
0x1285   : > { %v2582_v8 = vpop.eup %2581 }
0x1286   : > { %1553 = vrot.lane.b32.xlu1 %v2582_v8, %s2831_s28 }
0x12f8   : > { %v1554_v43 = vpop.permute.xlu1 %1553 }
0x12f9   : > { %1948 = vst.msk [vmem:[%s3096_s30 + $0x30] sm:$0xff] %vm411_vm3, %v1554_v43  ;;  %v1561_v4 = vsel %vm411_vm3, %v1554_v43, %v1559_v42 }
0x12fa   : > { %2302 = vmatmul.mubr.msk.f32.vlgmr.msra.gmra.mrb[14].mxu1 %vm332_vm2, %v1561_v4 }
0x13cd   : > { %v1641_v17 = vpop.f32.mrb[14].mxu1 }
0x13ce   : > { %v1645_v44 = vadd.f32 %v1949_v14, %v1641_v17  ;;  %v2303_v45 = vpop.f32.mrb[15].mxu1 }
0x13d0   : > { %2313 = vmatmul.mubr.msk.f32.vlgmr.msra.gmra.mrb[14].mxu0 %vm411_vm3, %v1645_v44 }
0x14a3   : > { %v1719_v46 = vpop.f32.mrb[14].mxu0 }
0x14a4   : > { %1724 = vrot.lane.b32.xlu1 %v1719_v46, %s2830_s26  ;;  %v2314_v47 = vpop.f32.mrb[15].mxu0 }
0x14a8   : > { %1735 = vrot.lane.b32.xlu1 %v1645_v44, %s2830_s26 }
0x1516   : > { %v1725_v48 = vpop.permute.xlu1 %1724 }
0x1517   : > { %v1727_v49 = vadd.f32 %v1725_v48, %v1645_v44 }
0x1519   : > { %2583 = vtanh.f32 %v1727_v49 }
0x151a   : > { %v1736_v51 = vpop.permute.xlu1 %1735 }
0x1523   : > { %v2584_v50 = vpop.eup %2583 }
0x1524   : > { %1730 = vrot.lane.b32.xlu0 %v2584_v50, %s2831_s28 }
0x1592   : > { %1743 = sbr.rel (%p1953_p1) target bundleno = 5644 (0x160c), region = 60 }
0x1596   : > { %v1731_v52 = vpop.permute.xlu0 %1730 }
0x1597   : > { %1952 = vst.msk [vmem:[%s3096_s30 + $0x38] sm:$0xff] %vm411_vm3, %v1731_v52  ;;  %v1738_v53 = vsel %vm411_vm3, %v1731_v52, %v1736_v51 }
0x1598   : > { %1739 = vst.msk [vmem:[#allocation2] sm:$0xff] %vm332_vm2, %v1738_v53  ;;  %1745 = vrot.lane.b32.xlu0 (!%p1953_p1), %v1738_v53, %s2832_s13 }
0x160a   : > { %v1746_v54 = vpop.permute.xlu0 %1745 }
0x160b   : > { %1748 = vst.msk [vmem:[#allocation12] sm:$0xff] %vm411_vm3, %v1746_v54 }
0x160c PF: > { %s1962_s14 = sshll.u32 %s2811_s21, 10  ;;  %s1764_s25 = sshll.u32 %s3096_s30, 4  ;;  %s3321_s25 = int_to_ptr.vmem [resolvable:$true] %s1764_s25 }
0x160d   : > { %s3318_s24 = scalar_lea.hbm %s3396_s4, %s1962_s14  ;;  %s1750_s11 = scalar_lea.sflag [#allocation5], %s3078_s7 }
0x160e   : > { %s2699_s8 = scalar_lea.vmem %s3321_s25, 1024  ;;  %s2833_s1 = smov [#allocation11]  }
0x160f   : > { %p2700_p4 = scmp.ne.s32.totalorder %s3321_s25, %s2699_s8  ;;  %s2703_s16 = sshll.u32 %s2833_s1, 4  ;;  %s2704_s16 = int_to_ptr.vmem [resolvable:$false] %s2703_s16 }
0x1610   : > { %s2705_s21 = scalar_lea.vmem %s2704_s16, 2048  ;;  %p2706_p0 = scmp.lt.s32.totalorder %s3321_s25, %s2704_s16 }
0x1611   : > { %p2701_p6 = pnand %p2700_p4, %p3017_p2  ;;  %p2707_p5 = scmp.lt.s32.totalorder %s2705_s21, %s2699_s8 }
0x1613   : > { %p2702_p8 = pneg %p2701_p6  ;;  %p2708_p10 = por %p2707_p5, %p2706_p0 }
0x1615   : > { %p2709_p13 = pnand %p2708_p10, %p2702_p8 }
0x1617   : > { %2712 = shalt.err (!%p2709_p13)
}
0x1618   : > { %s2713_s12 = scalar_lea.hbm %s3318_s24, 1024  ;;  %s2717_s28 = scalar_lea.hbm %s3396_s4, 2048 }
0x1619   : > { %p2714_p9 = scmp.ne.s32.totalorder %s3318_s24, %s2713_s12  ;;  %p2718_p11 = scmp.lt.u32.totalorder %s3318_s24, %s3396_s4 }
0x161a   : > { %p2719_p12 = scmp.lt.u32.totalorder %s2717_s28, %s2713_s12  ;;  %p2721_p4 = scmp.lt.u32.totalorder %s2713_s12, %s3318_s24 }
0x161b   : > { %p2715_p3 = pnand %p2714_p9, %p3017_p2 }
0x161c   : > { %p2720_p1 = por %p2719_p12, %p2718_p11 }
0x161d   : > { %p2716_p7 = pneg %p2715_p3 }
0x161e   : > { %p2722_p6 = por %p2721_p4, %p2720_p1 }
0x1620   : > { %p2723_p8 = pnand %p2722_p6, %p2716_p7 }
0x1622   : > { %2726 = shalt.err (!%p2723_p8)
}
0x1623   : > { %s2834_s9 = smov 128   ;;  %s2835_s17 = smov 8  }
0x1624   : > { %2473 = dma.vmem_to_hbm [thread:$0]  (%p3017_p2), %s3321_s25, 1024, %s3318_s24, %s1750_s11, %s2834_s9, %s2834_s9, %s2835_s17  }
0x1625   : > { %s2836_s8 = smov [#allocation12]   ;;  %p3420_p5 = scmp.ne.s32.totalorder %s3406_s27, 0 }
0x1626   : > { %s1780_s1 = sshll.u32 %s2836_s8, 4  ;;  %s1781_s1 = int_to_ptr.vmem [resolvable:$true] %s1780_s1 }
0x1627   : > { %s2727_s16 = scalar_lea.vmem %s1781_s1, 128  ;;  %p2734_p9 = scmp.lt.s32.totalorder %s1781_s1, %s1781_s1 }
0x1628   : > { %p2728_p0 = scmp.ne.s32.totalorder %s1781_s1, %s2727_s16  ;;  %p2735_p3 = scmp.lt.s32.totalorder %s2727_s16, %s2727_s16 }
0x162a   : > { %p2729_p10 = pnand %p2728_p0, %p3420_p5  ;;  %p2736_p7 = por %p2735_p3, %p2734_p9 }
0x162c   : > { %p2730_p13 = pneg %p2729_p10 }
0x162e   : > { %p2737_p11 = pnand %p2736_p7, %p2730_p13 }
0x1630   : > { %2740 = shalt.err (!%p2737_p11)
}
0x1631   : > { %s2741_s15 = scalar_lea.hbm %s3397_s5, 128 }
0x1632   : > { %p2742_p2 = scmp.ne.s32.totalorder %s3397_s5, %s2741_s15  ;;  %p2747_p4 = scmp.lt.u32.totalorder %s2741_s15, %s3397_s5 }
0x1634   : > { %p2743_p12 = pnand %p2742_p2, %p3420_p5 }
0x1636   : > { %p2744_p1 = pneg %p2743_p12 }
0x1638   : > { %p2749_p6 = pnand %p2747_p4, %p2744_p1 }
0x163a   : > { %2752 = shalt.err (!%p2749_p6)
}
0x163b   : > { %2475 = dma.vmem_to_hbm [thread:$0]  (%p3420_p5), %s1781_s1, 128, %s3397_s5, [#allocation13]  }
0x163c   : > { %2790 = dma.done.wait (%p3420_p5), [#allocation13], 128  }
0x163d   : > { %2792 = vsyncadd (%p3420_p5), [#allocation13], 4294967168 }
0x163e PF: > { %s1796_s28 = sand.u32 1, %s2799_s18   ;;  %p3421_p8 = scmp.ne.s32.totalorder %s3408_s29, 0 }
0x163f   : > { %p3422_p0 = scmp.ge.s32.totalorder %s2819_s23, 2  ;;  %s1797_s13 = scalar_lea.sflag [#allocation5], %s1796_s28 }
0x1641   : > { %p2494_p10 = pnand %p3422_p0, %p3421_p8 }
0x1643   : > { %2794 = dma.done.wait (!%p2494_p10), %s1797_s13, 1024  }
0x1644   : > { %2796 = vsyncadd (!%p2494_p10), %s1797_s13, 4294966272  ;;  %s25_s23 = sadd.s32 1, %s2819_s23   ;;  %s3423_s18 = smov %s2803_s19 }
0x1645   : > { %p22_p13 = scmp.ge.s32.totalorder %s25_s23, 4   ;;  %s3424_s19 = smov %s2807_s20 }
0x1646   : > { %s3425_s20 = smov %s3029_s6  ;;  %s3426_s21 = smov %s2815_s22 }
0x1647   : > { %s3427_s22 = smov %s3429_s10  ;;  %24 = sbr.rel (!%p22_p13) target bundleno = 11 (0xb), region = 125 }
0x164e   :  { %1802 = vsyncpa [#allocation4], 1 }
0x164f   :  { %1804 = vsyncpa [#allocation4 + $0x1], 1 }
0x1650   :  { %1805 = vsyncpa [#allocation7], 1 }
0x1651   :  { %1806 = vsyncpa [#allocation10], 1 }
0x1652   :  { %1807 = vsyncpa [#allocation5], 1 }
0x1653   :  { %1809 = vsyncpa [#allocation5 + $0x1], 1 }
0x1654   :  { %1810 = vsyncpa [#allocation13], 1 }

</bundles_post_ra>
